<compile_context>
chip_gen: v7x
topology: tpu7x:2x2x1
jax: 0.10.0
libtpu: 0.0.40
codegen_flags: <defaults>
</compile_context>

<pallas_src>
import functools
import math

import jax
import jax.numpy as jnp
from jax import lax
from jax.experimental import pallas as pl
from jax.experimental.pallas import tpu as pltpu

LANE = 128


def _round_up(d, m=LANE):
    return ((d + m - 1) // m) * m


def _pad_dim(d):
    """128-pad small dims; above 256 pad to a multiple of 256 so _pick_tile
    never collapses to 128-wide tiles (costs at most 128 extra rows/cols)."""
    d128 = _round_up(d, LANE)
    return d128 if d128 <= 256 else _round_up(d128, 256)


def _pick_tile(dim, max_tile):
    """Largest multiple of 128 that divides `dim` and is <= max_tile."""
    t = min(dim, max_tile)
    while dim % t != 0:
        t -= LANE
    return t


def _pad2d(x, rows, cols):
    return jnp.pad(x, ((0, rows - x.shape[0]), (0, cols - x.shape[1])))


@functools.lru_cache(maxsize=1)
def _vmem_limit_bytes():
    """Per-generation scoped-VMEM budget: ~3/4 of physical capacity.
    v7x (64 MiB) -> 48 MiB; v5e/v6e (128 MiB) -> 96 MiB.  Clamped [32, 96] MiB."""
    try:
        phys = int(pltpu.get_tpu_info().vmem_capacity_bytes)
    except Exception:
        phys = 64 * 1024 * 1024  # conservative fallback (v7x-sized)
    return int(min(96 * 1024 * 1024, max(32 * 1024 * 1024, (phys * 3) // 4)))


# --------------------- tiled matmul (+ optional bias / relu) ------------------

def _matmul_kernel(*refs, apply_relu, has_bias):
    if has_bias:
        a_ref, b_ref, bias_ref, o_ref, acc_ref = refs
    else:
        a_ref, b_ref, o_ref, acc_ref = refs
        bias_ref = None
    k = pl.program_id(2)

    @pl.when(k == 0)
    def _():
        acc_ref[...] = jnp.zeros_like(acc_ref)

    acc_ref[...] += jnp.dot(a_ref[...], b_ref[...],
                            preferred_element_type=jnp.float32)

    @pl.when(k == pl.num_programs(2) - 1)
    def _():
        r = acc_ref[...]                       # f32 accumulator
        if has_bias:
            r = r + bias_ref[...]              # f32 bias add (VPU f32: ok on v5e)
        if apply_relu:
            r = jnp.maximum(r, 0.0)
        o_ref[...] = r.astype(o_ref.dtype)


def tiled_matmul(a, b, bias=None, *, apply_relu=False, out_dtype=jnp.bfloat16,
                 max_tm=512, max_tn=512, max_tk=1024):
    """C = act(A @ B [+ bias]).  A:(M,K) bf16, B:(K,N) bf16, bias:(1,N) f32."""
    M, K = a.shape
    _, N = b.shape
    tm = _pick_tile(M, max_tm)
    tn = _pick_tile(N, max_tn)
    tk = _pick_tile(K, max_tk)
    grid = (M // tm, N // tn, K // tk)
    has_bias = bias is not None

    in_specs = [pl.BlockSpec((tm, tk), lambda i, j, k: (i, k)),
                pl.BlockSpec((tk, tn), lambda i, j, k: (k, j))]
    operands = [a, b]
    if has_bias:
        in_specs.append(pl.BlockSpec((1, tn), lambda i, j, k: (0, j)))
        operands.append(bias)

    bytes_io = sum(int(o.size) * o.dtype.itemsize for o in operands) \
               + M * N * jnp.dtype(out_dtype).itemsize
    cost = pl.CostEstimate(flops=2 * M * N * K, transcendentals=0,
                           bytes_accessed=int(bytes_io))

    return pl.pallas_call(
        functools.partial(_matmul_kernel, apply_relu=apply_relu,
                          has_bias=has_bias),
        out_shape=jax.ShapeDtypeStruct((M, N), out_dtype),
        grid_spec=pltpu.PrefetchScalarGridSpec(
            num_scalar_prefetch=0,
            grid=grid,
            in_specs=in_specs,
            out_specs=pl.BlockSpec((tm, tn), lambda i, j, k: (i, j)),
            scratch_shapes=[pltpu.VMEM((tm, tn), jnp.float32)]),
        compiler_params=pltpu.CompilerParams(
            dimension_semantics=("parallel", "parallel", "arbitrary"),
            vmem_limit_bytes=_vmem_limit_bytes()),
        cost_estimate=cost,
    )(*operands)


# ------------- GraphPooling + fc3 + fc4 + log_softmax (fused head) -----------

def _pool_head_kernel(h2_ref, w3_ref, b3_ref, w4_ref, b4_ref, out_ref, acc_ref,
                      *, n_real, nclass_real, tm):
    i = pl.program_id(0)

    @pl.when(i == 0)
    def _():
        acc_ref[...] = jnp.zeros_like(acc_ref)

    # GraphPooling: sum over node rows; padded rows of h2 are relu(b2) != 0,
    # so mask them out before accumulating.
    row_ids = i * tm + lax.broadcasted_iota(jnp.int32, h2_ref.shape, 0)
    h = jnp.where(row_ids < n_real, h2_ref[...].astype(jnp.float32), 0.0)
    acc_ref[...] += jnp.sum(h, axis=0, keepdims=True)

    @pl.when(i == pl.num_programs(0) - 1)
    def _():
        p = jnp.maximum(acc_ref[...], 0.0)                       # (1, H2p) f32
        y = jnp.dot(p.astype(jnp.bfloat16), w3_ref[...],
                    preferred_element_type=jnp.float32) + b3_ref[...]
        y = jnp.maximum(y, 0.0)
        z = jnp.dot(y.astype(jnp.bfloat16), w4_ref[...],
                    preferred_element_type=jnp.float32) + b4_ref[...]
        col_ids = lax.broadcasted_iota(jnp.int32, z.shape, 1)
        z = jnp.where(col_ids < nclass_real, z, -1e30)           # mask pad classes
        z = z - jnp.max(z, axis=-1, keepdims=True)
        lse = jnp.log(jnp.sum(jnp.exp(z), axis=-1, keepdims=True))
        out_ref[...] = z - lse


def pool_head(h2, w3, b3, w4, b4, *, n_real, nclass_real, max_tm=2048):
    Np, H2p = h2.shape
    Hfp = w3.shape[1]
    Cp = w4.shape[1]
    tm = _pick_tile(Np, max_tm)
    return pl.pallas_call(
        functools.partial(_pool_head_kernel, n_real=n_real,
                          nclass_real=nclass_real, tm=tm),
        out_shape=jax.ShapeDtypeStruct((1, Cp), jnp.float32),
        grid_spec=pltpu.PrefetchScalarGridSpec(
            num_scalar_prefetch=0,
            grid=(Np // tm,),
            in_specs=[pl.BlockSpec((tm, H2p), lambda i: (i, 0)),
                      pl.BlockSpec((H2p, Hfp), lambda i: (0, 0)),
                      pl.BlockSpec((1, Hfp), lambda i: (0, 0)),
                      pl.BlockSpec((Hfp, Cp), lambda i: (0, 0)),
                      pl.BlockSpec((1, Cp), lambda i: (0, 0))],
            out_specs=pl.BlockSpec((1, Cp), lambda i: (0, 0)),
            scratch_shapes=[pltpu.VMEM((1, H2p), jnp.float32)]),
        compiler_params=pltpu.CompilerParams(
            dimension_semantics=("arbitrary",),
            vmem_limit_bytes=_vmem_limit_bytes()),
        cost_estimate=pl.CostEstimate(
            flops=int(Np * H2p + 2 * (H2p * Hfp + Hfp * Cp)),
            transcendentals=int(Cp + 1),
            bytes_accessed=int(h2.size * h2.dtype.itemsize
                               + (w3.size + w4.size) * 2
                               + 4 * (Hfp + 2 * Cp))),
    )(h2, w3, b3, w4, b4)


# -------------------- fully fused forward (small graphs) ---------------------

def _fused_kernel(x_ref, adj_ref, w1_ref, b1_ref, w2_ref, b2_ref,
                  w3_ref, b3_ref, w4_ref, b4_ref, out_ref,
                  *, n_real, nclass_real):
    bf = jnp.bfloat16
    adj = adj_ref[...]                                           # (Np, Np) bf16
    # gc1: relu(adj @ (x @ W1) + b1)
    s1 = jnp.dot(x_ref[...], w1_ref[...], preferred_element_type=jnp.float32)
    h1 = jnp.maximum(jnp.dot(adj, s1.astype(bf),
                             preferred_element_type=jnp.float32) + b1_ref[...], 0.0)
    # TODO(synk): F.dropout(x, p, training) — identity here (inference mode);
    # training parity would need pltpu.prng_seed / prng_random_bits masking.
    # gc2: relu(adj @ (h1 @ W2) + b2)
    s2 = jnp.dot(h1.astype(bf), w2_ref[...], preferred_element_type=jnp.float32)
    h2 = jnp.maximum(jnp.dot(adj, s2.astype(bf),
                             preferred_element_type=jnp.float32) + b2_ref[...], 0.0)
    # GraphPooling: mask padded node rows (they hold relu(b2)), sum, relu.
    row_ids = lax.broadcasted_iota(jnp.int32, h2.shape, 0)
    h2 = jnp.where(row_ids < n_real, h2, 0.0)
    p = jnp.maximum(jnp.sum(h2, axis=0, keepdims=True), 0.0)
    # fc3 + relu
    y = jnp.maximum(jnp.dot(p.astype(bf), w3_ref[...],
                            preferred_element_type=jnp.float32) + b3_ref[...], 0.0)
    # fc4 + log_softmax (exclude padded class columns)
    z = jnp.dot(y.astype(bf), w4_ref[...],
                preferred_element_type=jnp.float32) + b4_ref[...]
    col_ids = lax.broadcasted_iota(jnp.int32, z.shape, 1)
    z = jnp.where(col_ids < nclass_real, z, -1e30)
    z = z - jnp.max(z, axis=-1, keepdims=True)
    out_ref[...] = z - jnp.log(jnp.sum(jnp.exp(z), axis=-1, keepdims=True))


def fused_forward(xp, adjp, w1p, b1p, w2p, b2p, w3p, b3p, w4p, b4p, *,
                  n_real, nclass_real):
    Np, Fp = xp.shape
    Hp, H2p, Hfp, Cp = w1p.shape[1], w2p.shape[1], w3p.shape[1], w4p.shape[1]
    operands = (xp, adjp, w1p, b1p, w2p, b2p, w3p, b3p, w4p, b4p)
    in_specs = [pl.BlockSpec(tuple(o.shape), lambda i: (0, 0)) for o in operands]
    flops = 2 * (Np * Fp * Hp + Np * Np * Hp + Np * Hp * H2p + Np * Np * H2p
                 + H2p * Hfp + Hfp * Cp)
    bytes_io = sum(int(o.size) * o.dtype.itemsize for o in operands) + 4 * Cp
    return pl.pallas_call(
        functools.partial(_fused_kernel, n_real=n_real, nclass_real=nclass_real),
        out_shape=jax.ShapeDtypeStruct((1, Cp), jnp.float32),
        grid_spec=pltpu.PrefetchScalarGridSpec(
            num_scalar_prefetch=0,
            grid=(1,),
            in_specs=in_specs,
            out_specs=pl.BlockSpec((1, Cp), lambda i: (0, 0))),
        compiler_params=pltpu.CompilerParams(
            dimension_semantics=("arbitrary",),
            vmem_limit_bytes=_vmem_limit_bytes()),
        cost_estimate=pl.CostEstimate(flops=int(flops),
                                      transcendentals=int(Cp + 1),
                                      bytes_accessed=int(bytes_io)),
    )(*operands)


# ------------------------------- full forward --------------------------------

def gcn_forward(x, adj, params, *, force_tiled=False):
    """x: (N, nfeat) f32, adj: (N, N) f32. Returns (nclass,) f32 log-probs."""
    w1, b1, w2, b2, w3, b3, w4, b4 = params
    N, F = x.shape
    H, H2, Hf, C = w1.shape[1], w2.shape[1], w3.shape[1], w4.shape[1]
    Np, Fp, Hp, H2p, Hfp, Cp = map(_pad_dim, (N, F, H, H2, Hf, C))

    bf, f32 = jnp.bfloat16, jnp.float32
    # Lane-dense padding + bf16 MXU operand format; biases stay f32.
    xp = _pad2d(x, Np, Fp).astype(bf)
    adjp = _pad2d(adj, Np, Np).astype(bf)
    w1p = _pad2d(w1, Fp, Hp).astype(bf)
    w2p = _pad2d(w2, Hp, H2p).astype(bf)
    w3p = _pad2d(w3, H2p, Hfp).astype(bf)
    w4p = _pad2d(w4, Hfp, Cp).astype(bf)
    b1p = _pad2d(b1, 1, Hp).astype(f32)
    b2p = _pad2d(b2, 1, H2p).astype(f32)
    b3p = _pad2d(b3, 1, Hfp).astype(f32)
    b4p = _pad2d(b4, 1, Cp).astype(f32)

    # Estimated VMEM footprint of the fully fused path: bf16 inputs plus the
    # f32 intermediates (s1, h1, s2, h2) Mosaic must hold.
    fused_bytes = (2 * (Np * Np + Np * Fp + Fp * Hp + Hp * H2p + H2p * Hfp
                        + Hfp * Cp)
                   + 4 * (2 * Np * Hp + 2 * Np * H2p)
                   + 4 * (Hp + H2p + Hfp + Cp))
    if (not force_tiled) and fused_bytes * 3 < _vmem_limit_bytes():
        outp = fused_forward(xp, adjp, w1p, b1p, w2p, b2p, w3p, b3p, w4p, b4p,
                             n_real=N, nclass_real=C)
        return outp[0, :C]

    # Tiled path for graphs that don't fit in VMEM.
    # gc1: relu(adj @ (x @ W1) + b1)
    s1 = tiled_matmul(xp, w1p, apply_relu=False)
    h1 = tiled_matmul(adjp, s1, b1p, apply_relu=True)
    # TODO(synk): dropout is identity (inference); `print(x)` in the reference
    # forward is host-side debug output and is omitted.
    # gc2: relu(adj @ (h1 @ W2) + b2)
    s2 = tiled_matmul(h1, w2p, apply_relu=False)
    h2 = tiled_matmul(adjp, s2, b2p, apply_relu=True)
    # GraphPooling + fc3 + fc4 + log_softmax (fused head).
    outp = pool_head(h2, w3p, b3p, w4p, b4p, n_real=N, nclass_real=C)
    return outp[0, :C]


# ------------------------------ params / reference ---------------------------

def init_params(key, nfeat, nhid, nclass):
    """Deterministic parameter init mirroring the module's shapes/init ranges."""
    ks = jax.random.split(key, 8)

    def uni(k, shape, bound):
        return jax.random.uniform(k, shape, jnp.float32, -bound, bound)

    s1 = 1.0 / math.sqrt(nhid)
    w1 = uni(ks[0], (nfeat, nhid), s1)
    b1 = uni(ks[1], (1, nhid), s1)
    s2 = 1.0 / math.sqrt(2 * nhid)
    w2 = uni(ks[2], (nhid, 2 * nhid), s2)
    b2 = uni(ks[3], (1, 2 * nhid), s2)
    s3 = 1.0 / math.sqrt(2 * nhid)
    w3 = uni(ks[4], (2 * nhid, nhid), s3)     # fc3 stored as (in, out)
    b3 = uni(ks[5], (1, nhid), s3)
    s4 = 1.0 / math.sqrt(nhid)
    w4 = uni(ks[6], (nhid, nclass), s4)       # fc4 stored as (in, out)
    b4 = uni(ks[7], (1, nclass), s4)
    return (w1, b1, w2, b2, w3, b3, w4, b4)


def _reference_forward(x, adj, params):
    w1, b1, w2, b2, w3, b3, w4, b4 = params
    h = jnp.maximum(adj @ (x @ w1) + b1, 0.0)
    h = jnp.maximum(adj @ (h @ w2) + b2, 0.0)
    p = jnp.maximum(jnp.sum(h, axis=0, keepdims=True), 0.0)
    y = jnp.maximum(p @ w3 + b3, 0.0)
    z = y @ w4 + b4
    z = z - jnp.max(z, axis=-1, keepdims=True)
    return (z - jnp.log(jnp.sum(jnp.exp(z), axis=-1, keepdims=True)))[0]


if __name__ == "__main__":
    N, nfeat, nhid, nclass = 8, 16, 32, 8

    key = jax.random.PRNGKey(0)
    k_x, k_adj, k_p = jax.random.split(key, 3)

    x = jax.random.normal(k_x, (N, nfeat), jnp.float32)
    # Symmetric, row-normalized dense adjacency (deterministic).
    a = jax.random.uniform(k_adj, (N, N), jnp.float32)
    adj = (a + a.T) * 0.5 + jnp.eye(N, dtype=jnp.float32)
    adj = adj / jnp.sum(adj, axis=1, keepdims=True)

    params = init_params(k_p, nfeat, nhid, nclass)

    ref = _reference_forward(x, adj, params)

    # Fused single-kernel path (selected automatically at this problem size).
    out = gcn_forward(x, adj, params)
    jax.block_until_ready(out)
    assert out.shape == (nclass,)
    assert float(jnp.max(jnp.abs(out - ref))) < 0.1

    # Also exercise the tiled multi-kernel path (used for large graphs).
    out_tiled = gcn_forward(x, adj, params, force_tiled=True)
    jax.block_until_ready(out_tiled)
    assert out_tiled.shape == (nclass,)
    assert float(jnp.max(jnp.abs(out_tiled - ref))) < 0.1

    print("KERNEL_OK")
</pallas_src>

<mosaic_0001>
module attributes {stable_mosaic.version = 11 : i64} {
  func.func @_fused_kernel(%arg0: i32, %arg1: memref<128x128xbf16, #tpu.memory_space<vmem>>, %arg2: memref<128x128xbf16, #tpu.memory_space<vmem>>, %arg3: memref<128x128xbf16, #tpu.memory_space<vmem>>, %arg4: memref<1x128xf32, #tpu.memory_space<vmem>>, %arg5: memref<128x128xbf16, #tpu.memory_space<vmem>>, %arg6: memref<1x128xf32, #tpu.memory_space<vmem>>, %arg7: memref<128x128xbf16, #tpu.memory_space<vmem>>, %arg8: memref<1x128xf32, #tpu.memory_space<vmem>>, %arg9: memref<128x128xbf16, #tpu.memory_space<vmem>>, %arg10: memref<1x128xf32, #tpu.memory_space<vmem>>, %arg11: memref<1x128xf32, #tpu.memory_space<vmem>>) attributes {dimension_semantics = [#tpu.dimension_semantics<arbitrary>], iteration_bounds = array<i64: 1>, scalar_prefetch = 0 : i64, scratch_operands = 0 : i64, tpu.core_type = #tpu.core_type<tc>, window_params = [{pipeline_mode = #tpu.pipeline_mode<synchronous>, transform_indices = @transform_0, window_bounds = array<i64: 128, 128>}, {pipeline_mode = #tpu.pipeline_mode<synchronous>, transform_indices = @transform_1, window_bounds = array<i64: 128, 128>}, {pipeline_mode = #tpu.pipeline_mode<synchronous>, transform_indices = @transform_2, window_bounds = array<i64: 128, 128>}, {pipeline_mode = #tpu.pipeline_mode<synchronous>, transform_indices = @transform_3, window_bounds = array<i64: 1, 128>}, {pipeline_mode = #tpu.pipeline_mode<synchronous>, transform_indices = @transform_4, window_bounds = array<i64: 128, 128>}, {pipeline_mode = #tpu.pipeline_mode<synchronous>, transform_indices = @transform_5, window_bounds = array<i64: 1, 128>}, {pipeline_mode = #tpu.pipeline_mode<synchronous>, transform_indices = @transform_6, window_bounds = array<i64: 128, 128>}, {pipeline_mode = #tpu.pipeline_mode<synchronous>, transform_indices = @transform_7, window_bounds = array<i64: 1, 128>}, {pipeline_mode = #tpu.pipeline_mode<synchronous>, transform_indices = @transform_8, window_bounds = array<i64: 128, 128>}, {pipeline_mode = #tpu.pipeline_mode<synchronous>, transform_indices = @transform_9, window_bounds = array<i64: 1, 128>}, {pipeline_mode = #tpu.pipeline_mode<synchronous>, transform_indices = @transform_10, window_bounds = array<i64: 1, 128>}]} {
    %c0 = arith.constant 0 : index
    %c0_0 = arith.constant 0 : index
    %0 = vector.load %arg2[%c0, %c0_0] : memref<128x128xbf16, #tpu.memory_space<vmem>>, vector<128x128xbf16>
    %c0_1 = arith.constant 0 : index
    %c0_2 = arith.constant 0 : index
    %1 = vector.load %arg1[%c0_1, %c0_2] : memref<128x128xbf16, #tpu.memory_space<vmem>>, vector<128x128xbf16>
    %c0_3 = arith.constant 0 : index
    %c0_4 = arith.constant 0 : index
    %2 = vector.load %arg3[%c0_3, %c0_4] : memref<128x128xbf16, #tpu.memory_space<vmem>>, vector<128x128xbf16>
    %cst = arith.constant dense<0.000000e+00> : vector<128x128xf32>
    %3 = tpu.matmul %1, %2, %cst {dimension_numbers = #tpu.dot_dimension_numbers<[1], [0], [0], [1], [0, 0, 1, 1], [], []>} : vector<128x128xbf16>, vector<128x128xbf16>, vector<128x128xf32> -> vector<128x128xf32>
    %4 = arith.truncf %3 : vector<128x128xf32> to vector<128x128xbf16>
    %cst_5 = arith.constant dense<0.000000e+00> : vector<128x128xf32>
    %5 = tpu.matmul %0, %4, %cst_5 {dimension_numbers = #tpu.dot_dimension_numbers<[1], [0], [0], [1], [0, 0, 1, 1], [], []>} : vector<128x128xbf16>, vector<128x128xbf16>, vector<128x128xf32> -> vector<128x128xf32>
    %c0_6 = arith.constant 0 : index
    %c0_7 = arith.constant 0 : index
    %6 = vector.load %arg4[%c0_6, %c0_7] : memref<1x128xf32, #tpu.memory_space<vmem>>, vector<1x128xf32>
    %7 = vector.broadcast %6 : vector<1x128xf32> to vector<128x128xf32>
    %8 = arith.addf %5, %7 : vector<128x128xf32>
    %cst_8 = arith.constant 0.000000e+00 : f32
    %9 = vector.broadcast %cst_8 : f32 to vector<128x128xf32>
    %10 = arith.maximumf %8, %9 : vector<128x128xf32>
    %11 = arith.truncf %10 : vector<128x128xf32> to vector<128x128xbf16>
    %c0_9 = arith.constant 0 : index
    %c0_10 = arith.constant 0 : index
    %12 = vector.load %arg5[%c0_9, %c0_10] : memref<128x128xbf16, #tpu.memory_space<vmem>>, vector<128x128xbf16>
    %cst_11 = arith.constant dense<0.000000e+00> : vector<128x128xf32>
    %13 = tpu.matmul %11, %12, %cst_11 {dimension_numbers = #tpu.dot_dimension_numbers<[1], [0], [0], [1], [0, 0, 1, 1], [], []>} : vector<128x128xbf16>, vector<128x128xbf16>, vector<128x128xf32> -> vector<128x128xf32>
    %14 = arith.truncf %13 : vector<128x128xf32> to vector<128x128xbf16>
    %cst_12 = arith.constant dense<0.000000e+00> : vector<128x128xf32>
    %15 = tpu.matmul %0, %14, %cst_12 {dimension_numbers = #tpu.dot_dimension_numbers<[1], [0], [0], [1], [0, 0, 1, 1], [], []>} : vector<128x128xbf16>, vector<128x128xbf16>, vector<128x128xf32> -> vector<128x128xf32>
    %c0_13 = arith.constant 0 : index
    %c0_14 = arith.constant 0 : index
    %16 = vector.load %arg6[%c0_13, %c0_14] : memref<1x128xf32, #tpu.memory_space<vmem>>, vector<1x128xf32>
    %17 = vector.broadcast %16 : vector<1x128xf32> to vector<128x128xf32>
    %18 = arith.addf %15, %17 : vector<128x128xf32>
    %cst_15 = arith.constant 0.000000e+00 : f32
    %19 = vector.broadcast %cst_15 : f32 to vector<128x128xf32>
    %20 = arith.maximumf %18, %19 : vector<128x128xf32>
    %21 = tpu.iota {dimensions = array<i32: 0>} : vector<128x128xi32>
    %c8_i32 = arith.constant 8 : i32
    %22 = vector.broadcast %c8_i32 : i32 to vector<128x128xi32>
    %23 = arith.cmpi slt, %21, %22 : vector<128x128xi32>
    %cst_16 = arith.constant 0.000000e+00 : f32
    %24 = vector.broadcast %cst_16 : f32 to vector<128x128xf32>
    %25 = arith.select %23, %20, %24 : vector<128x128xi1>, vector<128x128xf32>
    %cst_17 = arith.constant dense<0.000000e+00> : vector<128xf32>
    %26 = vector.multi_reduction <add>, %25, %cst_17 [0] : vector<128x128xf32> to vector<128xf32>
    %27 = vector.shape_cast %26 : vector<128xf32> to vector<1x128xf32>
    %cst_18 = arith.constant 0.000000e+00 : f32
    %28 = vector.broadcast %cst_18 : f32 to vector<1x128xf32>
    %29 = arith.maximumf %27, %28 : vector<1x128xf32>
    %30 = arith.truncf %29 : vector<1x128xf32> to vector<1x128xbf16>
    %c0_19 = arith.constant 0 : index
    %c0_20 = arith.constant 0 : index
    %31 = vector.load %arg7[%c0_19, %c0_20] : memref<128x128xbf16, #tpu.memory_space<vmem>>, vector<128x128xbf16>
    %cst_21 = arith.constant dense<0.000000e+00> : vector<1x128xf32>
    %32 = tpu.matmul %30, %31, %cst_21 {dimension_numbers = #tpu.dot_dimension_numbers<[1], [0], [0], [1], [0, 0, 1, 1], [], []>} : vector<1x128xbf16>, vector<128x128xbf16>, vector<1x128xf32> -> vector<1x128xf32>
    %c0_22 = arith.constant 0 : index
    %c0_23 = arith.constant 0 : index
    %33 = vector.load %arg8[%c0_22, %c0_23] : memref<1x128xf32, #tpu.memory_space<vmem>>, vector<1x128xf32>
    %34 = arith.addf %32, %33 : vector<1x128xf32>
    %cst_24 = arith.constant 0.000000e+00 : f32
    %35 = vector.broadcast %cst_24 : f32 to vector<1x128xf32>
    %36 = arith.maximumf %34, %35 : vector<1x128xf32>
    %37 = arith.truncf %36 : vector<1x128xf32> to vector<1x128xbf16>
    %c0_25 = arith.constant 0 : index
    %c0_26 = arith.constant 0 : index
    %38 = vector.load %arg9[%c0_25, %c0_26] : memref<128x128xbf16, #tpu.memory_space<vmem>>, vector<128x128xbf16>
    %cst_27 = arith.constant dense<0.000000e+00> : vector<1x128xf32>
    %39 = tpu.matmul %37, %38, %cst_27 {dimension_numbers = #tpu.dot_dimension_numbers<[1], [0], [0], [1], [0, 0, 1, 1], [], []>} : vector<1x128xbf16>, vector<128x128xbf16>, vector<1x128xf32> -> vector<1x128xf32>
    %c0_28 = arith.constant 0 : index
    %c0_29 = arith.constant 0 : index
    %40 = vector.load %arg10[%c0_28, %c0_29] : memref<1x128xf32, #tpu.memory_space<vmem>>, vector<1x128xf32>
    %41 = arith.addf %39, %40 : vector<1x128xf32>
    %42 = tpu.iota {dimensions = array<i32: 1>} : vector<1x128xi32>
    %c8_i32_30 = arith.constant 8 : i32
    %43 = vector.broadcast %c8_i32_30 : i32 to vector<1x128xi32>
    %44 = arith.cmpi slt, %42, %43 : vector<1x128xi32>
    %cst_31 = arith.constant -1.000000e+30 : f32
    %45 = vector.broadcast %cst_31 : f32 to vector<1x128xf32>
    %46 = arith.select %44, %41, %45 : vector<1x128xi1>, vector<1x128xf32>
    %cst_32 = arith.constant dense<0xFF800000> : vector<1xf32>
    %47 = vector.multi_reduction <maximumf>, %46, %cst_32 [1] : vector<1x128xf32> to vector<1xf32>
    %48 = vector.shape_cast %47 : vector<1xf32> to vector<1x1xf32>
    %49 = vector.broadcast %48 : vector<1x1xf32> to vector<1x128xf32>
    %50 = arith.subf %46, %49 : vector<1x128xf32>
    %51 = math.exp %50 : vector<1x128xf32>
    %cst_33 = arith.constant dense<0.000000e+00> : vector<1xf32>
    %52 = vector.multi_reduction <add>, %51, %cst_33 [1] : vector<1x128xf32> to vector<1xf32>
    %53 = vector.shape_cast %52 : vector<1xf32> to vector<1x1xf32>
    %54 = math.log %53 : vector<1x1xf32>
    %55 = vector.broadcast %54 : vector<1x1xf32> to vector<1x128xf32>
    %56 = arith.subf %50, %55 : vector<1x128xf32>
    %c0_34 = arith.constant 0 : index
    %c0_35 = arith.constant 0 : index
    %57 = vector.load %arg11[%c0_34, %c0_35] : memref<1x128xf32, #tpu.memory_space<vmem>>, vector<1x128xf32>
    tpu.vector_store %arg11[%c0_34, %c0_35], %56 {strides = array<i32>} : memref<1x128xf32, #tpu.memory_space<vmem>>, vector<1x128xf32>,
    return
  }
  func.func @transform_0(%arg0: i32) -> (i32, i32) {
    %c0_i32 = arith.constant 0 : i32
    %c0_i32_0 = arith.constant 0 : i32
    %c0_i32_1 = arith.constant 0 : i32
    return %c0_i32, %c0_i32_0 : i32, i32
  }
  func.func @transform_1(%arg0: i32) -> (i32, i32) {
    %c0_i32 = arith.constant 0 : i32
    %c0_i32_0 = arith.constant 0 : i32
    %c0_i32_1 = arith.constant 0 : i32
    return %c0_i32, %c0_i32_0 : i32, i32
  }
  func.func @transform_2(%arg0: i32) -> (i32, i32) {
    %c0_i32 = arith.constant 0 : i32
    %c0_i32_0 = arith.constant 0 : i32
    %c0_i32_1 = arith.constant 0 : i32
    return %c0_i32, %c0_i32_0 : i32, i32
  }
  func.func @transform_3(%arg0: i32) -> (i32, i32) {
    %c0_i32 = arith.constant 0 : i32
    %c0_i32_0 = arith.constant 0 : i32
    %c0_i32_1 = arith.constant 0 : i32
    return %c0_i32, %c0_i32_0 : i32, i32
  }
  func.func @transform_4(%arg0: i32) -> (i32, i32) {
    %c0_i32 = arith.constant 0 : i32
    %c0_i32_0 = arith.constant 0 : i32
    %c0_i32_1 = arith.constant 0 : i32
    return %c0_i32, %c0_i32_0 : i32, i32
  }
  func.func @transform_5(%arg0: i32) -> (i32, i32) {
    %c0_i32 = arith.constant 0 : i32
    %c0_i32_0 = arith.constant 0 : i32
    %c0_i32_1 = arith.constant 0 : i32
    return %c0_i32, %c0_i32_0 : i32, i32
  }
  func.func @transform_6(%arg0: i32) -> (i32, i32) {
    %c0_i32 = arith.constant 0 : i32
    %c0_i32_0 = arith.constant 0 : i32
    %c0_i32_1 = arith.constant 0 : i32
    return %c0_i32, %c0_i32_0 : i32, i32
  }
  func.func @transform_7(%arg0: i32) -> (i32, i32) {
    %c0_i32 = arith.constant 0 : i32
    %c0_i32_0 = arith.constant 0 : i32
    %c0_i32_1 = arith.constant 0 : i32
    return %c0_i32, %c0_i32_0 : i32, i32
  }
  func.func @transform_8(%arg0: i32) -> (i32, i32) {
    %c0_i32 = arith.constant 0 : i32
    %c0_i32_0 = arith.constant 0 : i32
    %c0_i32_1 = arith.constant 0 : i32
    return %c0_i32, %c0_i32_0 : i32, i32
  }
  func.func @transform_9(%arg0: i32) -> (i32, i32) {
    %c0_i32 = arith.constant 0 : i32
    %c0_i32_0 = arith.constant 0 : i32
    %c0_i32_1 = arith.constant 0 : i32
    return %c0_i32, %c0_i32_0 : i32, i32
  }
  func.func @transform_10(%arg0: i32) -> (i32, i32) {
    %c0_i32 = arith.constant 0 : i32
    %c0_i32_0 = arith.constant 0 : i32
    %c0_i32_1 = arith.constant 0 : i32
    return %c0_i32, %c0_i32_0 : i32, i32
  }
}

</mosaic_0001>

<bundles_post_ra>
// kernel: tpu_custom_call.1
= control target key start
LH: loop header
LB: loop body
LE: loop exit
PB: predicated region body
PF: predicated region fallthrough
CT: control target
= control target key end

     0   :  { %15 = vsyncpa [#allocation3], 0  ;;  %s1931_s0 = inlined_call_operand.hbm [shape: bf16[128,128], index: 0, kind: input, shape index: {}]   ;;  %s1932_s1 = inlined_call_operand.hbm [shape: bf16[128,128], index: 1, kind: input, shape index: {}]   ;;  %s1933_s2 = inlined_call_operand.hbm [shape: bf16[128,128], index: 2, kind: input, shape index: {}]   ;;  %s1934_s3 = inlined_call_operand.vmem [shape: f32[1,128], index: 3, kind: input, shape index: {}]   ;;  %s1935_s4 = inlined_call_operand.hbm [shape: bf16[128,128], index: 4, kind: input, shape index: {}]   ;;  %s1936_s5 = inlined_call_operand.vmem [shape: f32[1,128], index: 5, kind: input, shape index: {}]   ;;  %s1937_s6 = inlined_call_operand.hbm [shape: bf16[128,128], index: 6, kind: input, shape index: {}]   ;;  %s1938_s7 = inlined_call_operand.vmem [shape: f32[1,128], index: 7, kind: input, shape index: {}]   ;;  %s1939_s8 = inlined_call_operand.hbm [shape: bf16[128,128], index: 8, kind: input, shape index: {}]   ;;  %s1940_s9 = inlined_call_operand.vmem [shape: f32[1,128], index: 9, kind: input, shape index: {}]   ;;  %s1941_s10 = inlined_call_operand.hbm [shape: f32[1,128], index: 10, kind: output, shape index: {}]  }
   0x1   :  { %16 = vsyncpa [#allocation6], 0 }
   0x2   :  { %17 = vsyncpa [#allocation9], 0 }
   0x3   :  { %18 = vsyncpa [#allocation12], 0 }
   0x4   :  { %19 = vsyncpa [#allocation4], 0  ;;  %s1680_s13 = smov [#allocation5]   ;;  %s1681_s15 = smov [#allocation8]  }
   0x5   :  { %s37_s14 = sshll.u32 %s1680_s13, 4  ;;  %s63_s16 = sshll.u32 %s1681_s15, 4  ;;  %s38_s14 = int_to_ptr.vmem [resolvable:$true] %s37_s14  ;;  %s1746_s16 = int_to_ptr.vmem [resolvable:$true] %s63_s16 }
   0x6   :  { %s1516_s19 = scalar_lea.hbm %s1932_s1, 1024 }
   0x7   :  { %p1517_p0 = scmp.ne.s32.totalorder %s1932_s1, %s1516_s19  ;;  %p1520_p1 = scmp.lt.u32.totalorder %s1516_s19, %s1932_s1 }
   0x9   :  { %p1522_p2 = pnand %p1520_p1, %p1517_p0 }
   0xb   :  { %1525 = shalt.err (!%p1522_p2)
}
   0xc   :  { %s1526_s24 = scalar_lea.vmem %s38_s14, 1024  ;;  %p1531_p4 = scmp.lt.s32.totalorder %s38_s14, %s38_s14 }
   0xd   :  { %p1527_p3 = scmp.ne.s32.totalorder %s38_s14, %s1526_s24  ;;  %p1532_p5 = scmp.lt.s32.totalorder %s1526_s24, %s1526_s24 }
   0xf   :  { %p1533_p6 = por %p1532_p5, %p1531_p4 }
  0x11   :  { %p1534_p7 = pnand %p1533_p6, %p1527_p3 }
  0x13   :  { %1537 = shalt.err (!%p1534_p7)
}
  0x14   :  { %s1682_s25 = smov 64   ;;  %s1683_s26 = smov 4  }
  0x15   :  { %43 = dma.hbm_to_vmem [thread:$0]  %s1932_s1, 1024, %s38_s14, [#allocation6], %s1682_s25, %s1682_s25, %s1683_s26  }
  0x16   :  { %s1538_s11 = scalar_lea.hbm %s1935_s4, 1024 }
  0x17   :  { %p1539_p8 = scmp.ne.s32.totalorder %s1935_s4, %s1538_s11  ;;  %p1542_p9 = scmp.lt.u32.totalorder %s1538_s11, %s1935_s4 }
  0x19   :  { %p1544_p10 = pnand %p1542_p9, %p1539_p8 }
  0x1b   :  { %1547 = shalt.err (!%p1544_p10)
}
  0x1c   :  { %s1548_s18 = scalar_lea.vmem %s1746_s16, 1024  ;;  %p1553_p12 = scmp.lt.s32.totalorder %s1746_s16, %s1746_s16 }
  0x1d   :  { %p1549_p11 = scmp.ne.s32.totalorder %s1746_s16, %s1548_s18  ;;  %p1554_p13 = scmp.lt.s32.totalorder %s1548_s18, %s1548_s18 }
  0x1f   :  { %p1555_p0 = por %p1554_p13, %p1553_p12 }
  0x21   :  { %p1556_p1 = pnand %p1555_p0, %p1549_p11 }
  0x23   :  { %1559 = shalt.err (!%p1556_p1)
}
  0x24   :  { %69 = dma.hbm_to_vmem [thread:$0]  %s1935_s4, 1024, %s1746_s16, [#allocation9], %s1682_s25, %s1682_s25, %s1683_s26  }
  0x25   :  { %s1684_s19 = smov [#allocation2]   ;;  %s1685_s21 = smov [#allocation7]  }
  0x26   :  { %s25_s20 = sshll.u32 %s1684_s19, 4  ;;  %s49_s22 = sshll.u32 %s1685_s21, 4  ;;  %s26_s20 = int_to_ptr.vmem [resolvable:$true] %s25_s20  ;;  %s1783_s22 = int_to_ptr.vmem [resolvable:$true] %s49_s22 }
  0x27   :  { %s1560_s27 = scalar_lea.hbm %s1931_s0, 1024 }
  0x28   :  { %p1561_p2 = scmp.ne.s32.totalorder %s1931_s0, %s1560_s27  ;;  %p1564_p3 = scmp.lt.u32.totalorder %s1560_s27, %s1931_s0 }
  0x2a   :  { %p1566_p4 = pnand %p1564_p3, %p1561_p2 }
  0x2c   :  { %1569 = shalt.err (!%p1566_p4)
}
  0x2d   :  { %s1570_s4 = scalar_lea.vmem %s26_s20, 1024  ;;  %p1575_p6 = scmp.lt.s32.totalorder %s26_s20, %s26_s20 }
  0x2e   :  { %p1571_p5 = scmp.ne.s32.totalorder %s26_s20, %s1570_s4  ;;  %p1576_p7 = scmp.lt.s32.totalorder %s1570_s4, %s1570_s4 }
  0x30   :  { %p1577_p8 = por %p1576_p7, %p1575_p6 }
  0x32   :  { %p1578_p9 = pnand %p1577_p8, %p1571_p5 }
  0x34   :  { %1581 = shalt.err (!%p1578_p9)
}
  0x35   :  { %31 = dma.hbm_to_vmem [thread:$0]  %s1931_s0, 1024, %s26_s20, [#allocation3], %s1682_s25, %s1682_s25, %s1683_s26  }
  0x36   :  { %s1582_s17 = scalar_lea.hbm %s1933_s2, 1024 }
  0x37   :  { %p1583_p10 = scmp.ne.s32.totalorder %s1933_s2, %s1582_s17  ;;  %p1586_p11 = scmp.lt.u32.totalorder %s1582_s17, %s1933_s2 }
  0x39   :  { %p1588_p12 = pnand %p1586_p11, %p1583_p10 }
  0x3b   :  { %1591 = shalt.err (!%p1588_p12)
}
  0x3c   :  { %s1592_s21 = scalar_lea.vmem %s1783_s22, 1024  ;;  %p1597_p0 = scmp.lt.s32.totalorder %s1783_s22, %s1783_s22 }
  0x3d   :  { %p1593_p13 = scmp.ne.s32.totalorder %s1783_s22, %s1592_s21  ;;  %p1598_p1 = scmp.lt.s32.totalorder %s1592_s21, %s1592_s21 }
  0x3f   :  { %p1599_p2 = por %p1598_p1, %p1597_p0 }
  0x41   :  { %p1600_p3 = pnand %p1599_p2, %p1593_p13 }
  0x43   :  { %1603 = shalt.err (!%p1600_p3)
}
  0x44   :  { %55 = dma.hbm_to_vmem [thread:$0]  %s1933_s2, 1024, %s1783_s22, [#allocation6], %s1682_s25, %s1682_s25, %s1683_s26  }
  0x45   :  { %s1686_s23 = smov [#allocation10]   ;;  %s1687_s27 = smov [#allocation11]  }
  0x46   :  { %s77_s24 = sshll.u32 %s1686_s23, 4  ;;  %s91_s28 = sshll.u32 %s1687_s27, 4  ;;  %s78_s24 = int_to_ptr.vmem [resolvable:$true] %s77_s24  ;;  %s1820_s28 = int_to_ptr.vmem [resolvable:$true] %s91_s28 }
  0x47   :  { %s1604_s11 = scalar_lea.hbm %s1937_s6, 1024 }
  0x48   :  { %p1605_p4 = scmp.ne.s32.totalorder %s1937_s6, %s1604_s11  ;;  %p1608_p5 = scmp.lt.u32.totalorder %s1604_s11, %s1937_s6 }
  0x4a   :  { %p1610_p6 = pnand %p1608_p5, %p1605_p4 }
  0x4c   :  { %1613 = shalt.err (!%p1610_p6)
}
  0x4d   :  { %s1614_s2 = scalar_lea.vmem %s78_s24, 1024  ;;  %p1619_p8 = scmp.lt.s32.totalorder %s78_s24, %s78_s24 }
  0x4e   :  { %p1615_p7 = scmp.ne.s32.totalorder %s78_s24, %s1614_s2  ;;  %p1620_p9 = scmp.lt.s32.totalorder %s1614_s2, %s1614_s2 }
  0x50   :  { %p1621_p10 = por %p1620_p9, %p1619_p8 }
  0x52   :  { %p1622_p11 = pnand %p1621_p10, %p1615_p7 }
  0x54   :  { %1625 = shalt.err (!%p1622_p11)
}
  0x55   :  { %83 = dma.hbm_to_vmem [thread:$0]  %s1937_s6, 1024, %s78_s24, [#allocation9], %s1682_s25, %s1682_s25, %s1683_s26  }
  0x56   :  { %s1626_s1 = scalar_lea.hbm %s1939_s8, 1024 }
  0x57   :  { %p1627_p12 = scmp.ne.s32.totalorder %s1939_s8, %s1626_s1  ;;  %p1630_p13 = scmp.lt.u32.totalorder %s1626_s1, %s1939_s8 }
  0x59   :  { %p1632_p0 = pnand %p1630_p13, %p1627_p12 }
  0x5b   :  { %1635 = shalt.err (!%p1632_p0)
}
  0x5c   :  { %s1636_s20 = scalar_lea.vmem %s1820_s28, 1024  ;;  %p1641_p2 = scmp.lt.s32.totalorder %s1820_s28, %s1820_s28 }
  0x5d   :  { %p1637_p1 = scmp.ne.s32.totalorder %s1820_s28, %s1636_s20  ;;  %p1642_p3 = scmp.lt.s32.totalorder %s1636_s20, %s1636_s20 }
  0x5f   :  { %p1643_p4 = por %p1642_p3, %p1641_p2 }
  0x61   :  { %p1644_p5 = pnand %p1643_p4, %p1637_p1 }
  0x63   :  { %1647 = shalt.err (!%p1644_p5)
}
  0x64   :  { %97 = dma.hbm_to_vmem [thread:$0]  %s1939_s8, 1024, %s1820_s28, [#allocation12], %s1682_s25, %s1682_s25, %s1683_s26  }
  0x65   :  { %1670 = dma.done.wait [#allocation3], 1024  }
  0x66   :  { %1671 = vsyncadd [#allocation3], 4294966272 }
  0x67   :  { %1672 = dma.done.wait [#allocation6], 2048  }
  0x68   :  { %1673 = vsyncadd [#allocation6], 4294965248 }
  0x69   :  { %1674 = dma.done.wait [#allocation9], 2048  }
  0x6a   :  { %1675 = vsyncadd [#allocation9], 4294965248 }
  0x6b   :  { %1676 = dma.done.wait [#allocation12], 1024  }
  0x6c   :  { %1677 = vsyncadd [#allocation12], 4294966272  ;;  %v1464_v0 = vld [vmem:[#allocation7] sm:$0xff]   ;;  %v1465_v1 = vld [vmem:[#allocation7 + $0x8] sm:$0xff]   ;;  %vm1689_vm0 = vmmov 0   ;;  %vm1121_vm2 = vcmask 1040384  }
  0x6d   :  { %1285 = vmatprep.subr.bf16.mxu0 %v1464_v0  ;;  %v1466_v2 = vld [vmem:[#allocation7 + $0x10] sm:$0xff]   ;;  %v1467_v3 = vld [vmem:[#allocation7 + $0x18] sm:$0xff]   ;;  %v1472_v4 = vld [vmem:[#allocation2] sm:$0xff]  }
  0x6e   :  { %1286 = vmatpush3.bf16.msra.mxu0 %v1464_v0  ;;  %1301 = vmatprep.mubr.bf16.mxu0 %v1472_v4  ;;  %v1468_v5 = vld [vmem:[#allocation7 + $0x20] sm:$0xff]   ;;  %v1469_v6 = vld [vmem:[#allocation7 + $0x28] sm:$0xff]   ;;  %v1470_v7 = vld [vmem:[#allocation7 + $0x30] sm:$0xff]  }
  0x6f   :  { %1287 = vmatprep.subr.bf16.mxu0 %v1465_v1  ;;  %v1471_v8 = vld [vmem:[#allocation7 + $0x38] sm:$0xff]   ;;  %v1473_v9 = vld [vmem:[#allocation2 + $0x8] sm:$0xff]   ;;  %v1474_v10 = vld [vmem:[#allocation2 + $0x10] sm:$0xff]  }
  0x70   :  { %v1475_v11 = vld [vmem:[#allocation2 + $0x18] sm:$0xff]   ;;  %v1476_v12 = vld [vmem:[#allocation2 + $0x20] sm:$0xff]   ;;  %v1477_v13 = vld [vmem:[#allocation2 + $0x28] sm:$0xff]  }
  0x71   :  { %v1478_v14 = vld [vmem:[#allocation2 + $0x30] sm:$0xff]   ;;  %v1479_v15 = vld [vmem:[#allocation2 + $0x38] sm:$0xff]   ;;  %v1857_v16 = vld [vmem:[#allocation5] sm:$0xff]  }
  0x72   :  { %1288 = vmatpush3.bf16.msra.mxu0 %v1465_v1  ;;  %1333 = vmatprep.mubr.bf16.mxu1 %v1857_v16  ;;  %v1488_v17 = vld [vmem:[#allocation8] sm:$0xff]   ;;  %v1489_v18 = vld [vmem:[#allocation8 + $0x8] sm:$0xff]   ;;  %v1490_v19 = vld [vmem:[#allocation8 + $0x10] sm:$0xff]  }
  0x73   :  { %1289 = vmatprep.subr.bf16.mxu0 %v1466_v2  ;;  %v1491_v20 = vld [vmem:[#allocation8 + $0x18] sm:$0xff]   ;;  %v1492_v21 = vld [vmem:[#allocation8 + $0x20] sm:$0xff]   ;;  %v1493_v22 = vld [vmem:[#allocation8 + $0x28] sm:$0xff]  }
  0x74   :  { %v1860_v47 = vld [vmem:[#allocation5 + $0x8] sm:$0xff]   ;;  %v1862_v48 = vld [vmem:[#allocation5 + $0x10] sm:$0xff]   ;;  %v1866_v49 = vld [vmem:[#allocation5 + $0x18] sm:$0xff]  }
  0x75   :  { %v1868_v50 = vld [vmem:[#allocation5 + $0x20] sm:$0xff]   ;;  %v1872_v51 = vld [vmem:[#allocation5 + $0x28] sm:$0xff]   ;;  %v1874_v52 = vld [vmem:[#allocation5 + $0x30] sm:$0xff]  }
  0x76   :  { %1290 = vmatpush3.bf16.msra.mxu0 %v1466_v2  ;;  %v1878_v53 = vld [vmem:[#allocation5 + $0x38] sm:$0xff]   ;;  %v1494_v54 = vld [vmem:[#allocation8 + $0x30] sm:$0xff]   ;;  %v1169_v56 = vld [vmem:[%s1934_s3] ss:$0 sm:$0xff] }
  0x77   :  { %1291 = vmatprep.subr.bf16.mxu0 %v1467_v3  ;;  %v1495_v55 = vld [vmem:[#allocation8 + $0x38] sm:$0xff]  }
  0x7a   :  { %1292 = vmatpush3.bf16.msra.mxu0 %v1467_v3 }
  0x7b   :  { %1293 = vmatprep.subr.bf16.mxu0 %v1468_v5 }
  0x7e   :  { %1294 = vmatpush3.bf16.msra.mxu0 %v1468_v5 }
  0x7f   :  { %1295 = vmatprep.subr.bf16.mxu0 %v1469_v6 }
  0x82   :  { %1296 = vmatpush3.bf16.msra.mxu0 %v1469_v6 }
  0x83   :  { %1297 = vmatprep.subr.bf16.mxu0 %v1470_v7 }
  0x86   :  { %1298 = vmatpush3.bf16.msra.mxu0 %v1470_v7 }
  0x87   :  { %1299 = vmatprep.subr.bf16.mxu0 %v1471_v8 }
  0x8a   :  { %1300 = vmatpush3.bf16.msra.mxu0 %v1471_v8 }
  0x8b   :  { %1349 = vmatprep.subr.bf16.mxu0 %v1488_v17 }
  0x8d   :  { %1302 = vmatmul.mubr.bf16.vlgmr.msra.gmra.mrb[0].mxu0 %v1473_v9 }
  0x8e   :  { %1305 = vmatprep.mubr.bf16.mxu0 %v1474_v10  ;;  %1350 = vmatpush3.bf16.msra.mxu0 %v1488_v17 }
  0x8f   :  { %1351 = vmatprep.subr.bf16.mxu0 %v1489_v18 }
  0x92   :  { %1352 = vmatpush3.bf16.msra.mxu0 %v1489_v18 }
  0x93   :  { %1353 = vmatprep.subr.bf16.mxu0 %v1490_v19 }
  0x95   :  { %1306 = vmatmul.mubr.bf16.gmra.mrb[4].mxu0 %v1475_v11 }
  0x96   :  { %1309 = vmatprep.mubr.bf16.mxu0 %v1476_v12  ;;  %1354 = vmatpush3.bf16.msra.mxu0 %v1490_v19 }
  0x97   :  { %1355 = vmatprep.subr.bf16.mxu0 %v1491_v20 }
  0x9a   :  { %1356 = vmatpush3.bf16.msra.mxu0 %v1491_v20 }
  0x9b   :  { %1357 = vmatprep.subr.bf16.mxu0 %v1492_v21 }
  0x9d   :  { %1310 = vmatmul.mubr.bf16.gmra.mrb[8].mxu0 %v1477_v13 }
  0x9e   :  { %1313 = vmatprep.mubr.bf16.mxu0 %v1478_v14  ;;  %1358 = vmatpush3.bf16.msra.mxu0 %v1492_v21 }
  0x9f   :  { %1359 = vmatprep.subr.bf16.mxu0 %v1493_v22 }
  0xa2   :  { %1360 = vmatpush3.bf16.msra.mxu0 %v1493_v22 }
  0xa3   :  { %1361 = vmatprep.subr.bf16.mxu0 %v1494_v54 }
  0xa5   :  { %1314 = vmatmul.mubr.bf16.gmra.mrb[12].mxu0 %v1479_v15 }
  0xa6   :  { %1362 = vmatpush3.bf16.msra.mxu0 %v1494_v54 }
  0xa7   :  { %1363 = vmatprep.subr.bf16.mxu0 %v1495_v55 }
  0xaa   :  { %1364 = vmatpush3.bf16.msra.mxu0 %v1495_v55 }
 0x160   :  { %v1303_v23 = vpop.f32.mrb[0].mxu0 }
 0x161   :  { %v297_v24 = vpop.f32.mrb[1].mxu0 }
 0x162   :  { %v1304_v25 = vpop.f32.mrb[2].mxu0 }
 0x163   :  { %v361_v26 = vpack.c.bf16 %v1304_v25, %v1303_v23  ;;  %v300_v27 = vpop.f32.mrb[3].mxu0 }
 0x164   :  { %v360_v28 = vpack.c.bf16 %v300_v27, %v297_v24 }
 0x166   :  { %1317 = vmatprep.subr.bf16.mxu1 %v360_v28 }
 0x167   :  { %1318 = vmatpush3.bf16.msra.mxu1 %v360_v28 }
 0x168   :  { %v1307_v29 = vpop.f32.mrb[4].mxu0  ;;  %1319 = vmatprep.subr.bf16.mxu1 %v361_v26 }
 0x169   :  { %v313_v30 = vpop.f32.mrb[5].mxu0 }
 0x16a   :  { %v1308_v31 = vpop.f32.mrb[6].mxu0 }
 0x16b   :  { %v363_v32 = vpack.c.bf16 %v1308_v31, %v1307_v29  ;;  %v316_v33 = vpop.f32.mrb[7].mxu0  ;;  %1320 = vmatpush3.bf16.msra.mxu1 %v361_v26 }
 0x16c   :  { %v362_v34 = vpack.c.bf16 %v316_v33, %v313_v30 }
 0x16e   :  { %1321 = vmatprep.subr.bf16.mxu1 %v362_v34 }
 0x16f   :  { %1322 = vmatpush3.bf16.msra.mxu1 %v362_v34 }
 0x170   :  { %v1311_v35 = vpop.f32.mrb[8].mxu0  ;;  %1323 = vmatprep.subr.bf16.mxu1 %v363_v32 }
 0x171   :  { %v329_v36 = vpop.f32.mrb[9].mxu0 }
 0x172   :  { %v1312_v37 = vpop.f32.mrb[10].mxu0 }
 0x173   :  { %v365_v38 = vpack.c.bf16 %v1312_v37, %v1311_v35  ;;  %v332_v39 = vpop.f32.mrb[11].mxu0  ;;  %1324 = vmatpush3.bf16.msra.mxu1 %v363_v32 }
 0x174   :  { %v364_v40 = vpack.c.bf16 %v332_v39, %v329_v36 }
 0x176   :  { %1325 = vmatprep.subr.bf16.mxu1 %v364_v40 }
 0x177   :  { %1326 = vmatpush3.bf16.msra.mxu1 %v364_v40 }
 0x178   :  { %v1315_v41 = vpop.f32.mrb[12].mxu0  ;;  %1327 = vmatprep.subr.bf16.mxu1 %v365_v38 }
 0x179   :  { %v345_v42 = vpop.f32.mrb[13].mxu0 }
 0x17a   :  { %v1316_v43 = vpop.f32.mrb[14].mxu0 }
 0x17b   :  { %v367_v44 = vpack.c.bf16 %v1316_v43, %v1315_v41  ;;  %v348_v45 = vpop.f32.mrb[15].mxu0  ;;  %1328 = vmatpush3.bf16.msra.mxu1 %v365_v38 }
 0x17c   :  { %v366_v46 = vpack.c.bf16 %v348_v45, %v345_v42 }
 0x17e   :  { %1329 = vmatprep.subr.bf16.mxu1 %v366_v46 }
 0x17f   :  { %1330 = vmatpush3.bf16.msra.mxu1 %v366_v46 }
 0x180   :  { %1331 = vmatprep.subr.bf16.mxu1 %v367_v44 }
 0x183   :  { %1332 = vmatpush3.bf16.msra.mxu1 %v367_v44 }
 0x186   :  { %1334 = vmatmul.mubr.bf16.vlgmr.msra.gmra.mrb[0].mxu1 %v1860_v47 }
 0x187   :  { %1337 = vmatprep.mubr.bf16.mxu1 %v1862_v48 }
 0x18e   :  { %1338 = vmatmul.mubr.bf16.gmra.mrb[4].mxu1 %v1866_v49 }
 0x18f   :  { %1341 = vmatprep.mubr.bf16.mxu1 %v1868_v50 }
 0x196   :  { %1342 = vmatmul.mubr.bf16.gmra.mrb[8].mxu1 %v1872_v51 }
 0x197   :  { %1345 = vmatprep.mubr.bf16.mxu1 %v1874_v52 }
 0x19e   :  { %1346 = vmatmul.mubr.bf16.gmra.mrb[12].mxu1 %v1878_v53 }
 0x19f   :  { %1397 = vmatprep.mubr.bf16.mxu1 %v1857_v16 }
 0x259   :  { %v1335_v57 = vpop.f32.mrb[0].mxu1 }
 0x25a   :  { %v466_v58 = vadd.f32 %v1335_v57, %v1169_v56  ;;  %v457_v59 = vpop.f32.mrb[1].mxu1  ;;  %v1496_v57 = vld [vmem:[#allocation10] sm:$0xff]  }
 0x25b   :  { %v458_v60 = vadd.f32 %v1169_v56, %v457_v59  ;;  %v1336_v61 = vpop.f32.mrb[2].mxu1  ;;  %v1497_v59 = vld [vmem:[#allocation10 + $0x8] sm:$0xff]  }
 0x25c   :  { %v469_v62 = vadd.f32 %v1336_v61, %v1169_v56  ;;  %v460_v63 = vpop.f32.mrb[3].mxu1  ;;  %v522_v1 = vmax.f32 %v466_v58, 0.0  ;;  %v1688_v58 = vmov 0.0  }
 0x25d   :  { %v461_v0 = vadd.f32 %v1169_v56, %v460_v63  ;;  %v520_v3 = vmax.f32 %v458_v60, 0.0  ;;  %1413 = vmatprep.subr.bf16.mxu0 %v1688_v58  ;;  %v1498_v60 = vld [vmem:[#allocation10 + $0x10] sm:$0xff]  }
 0x25e   :  { %v523_v2 = vmax.f32 %v469_v62, 0.0 }
 0x25f   :  { %v521_v4 = vmax.f32 %v461_v0, 0.0 }
 0x260   :  { %v537_v5 = vpack.c.bf16 %v523_v2, %v522_v1 }
 0x261   :  { %v536_v6 = vpack.c.bf16 %v521_v4, %v520_v3  ;;  %v1339_v7 = vpop.f32.mrb[4].mxu1 }
 0x262   :  { %v482_v8 = vadd.f32 %v1339_v7, %v1169_v56  ;;  %v473_v9 = vpop.f32.mrb[5].mxu1 }
 0x263   :  { %v474_v10 = vadd.f32 %v1169_v56, %v473_v9  ;;  %v1340_v11 = vpop.f32.mrb[6].mxu1  ;;  %1365 = vmatprep.mubr.bf16.mxu0 %v536_v6 }
 0x264   :  { %v485_v12 = vadd.f32 %v1340_v11, %v1169_v56  ;;  %v476_v13 = vpop.f32.mrb[7].mxu1  ;;  %1366 = vmatmul.mubr.bf16.vlgmr.msra.gmra.mrb[16].mxu0 %v537_v5  ;;  %v526_v15 = vmax.f32 %v482_v8, 0.0 }
 0x265   :  { %v477_v14 = vadd.f32 %v1169_v56, %v476_v13  ;;  %v524_v17 = vmax.f32 %v474_v10, 0.0  ;;  %1414 = vmatpush3.bf16.msra.mxu0 %v1496_v57 }
 0x266   :  { %v527_v16 = vmax.f32 %v485_v12, 0.0  ;;  %1415 = vmatprep.subr.bf16.mxu0 %v1688_v58 }
 0x267   :  { %v525_v18 = vmax.f32 %v477_v14, 0.0 }
 0x268   :  { %v539_v19 = vpack.c.bf16 %v527_v16, %v526_v15 }
 0x269   :  { %v538_v20 = vpack.c.bf16 %v525_v18, %v524_v17  ;;  %v1343_v21 = vpop.f32.mrb[8].mxu1  ;;  %1416 = vmatpush3.bf16.msra.mxu0 %v1497_v59 }
 0x26a   :  { %v498_v22 = vadd.f32 %v1343_v21, %v1169_v56  ;;  %v489_v23 = vpop.f32.mrb[9].mxu1  ;;  %1417 = vmatprep.subr.bf16.mxu0 %v1688_v58  ;;  %v1500_v21 = vld [vmem:[#allocation10 + $0x20] sm:$0xff]  }
 0x26b   :  { %v490_v24 = vadd.f32 %v1169_v56, %v489_v23  ;;  %v1344_v25 = vpop.f32.mrb[10].mxu1  ;;  %1369 = vmatprep.mubr.bf16.mxu0 %v538_v20  ;;  %v1499_v20 = vld [vmem:[#allocation10 + $0x18] sm:$0xff]   ;;  %v1509_v23 = vld [vmem:[#allocation11 + $0x28] sm:$0xff]  }
 0x26c   :  { %v501_v26 = vadd.f32 %v1344_v25, %v1169_v56  ;;  %v492_v27 = vpop.f32.mrb[11].mxu1  ;;  %1370 = vmatmul.mubr.bf16.gmra.mrb[20].mxu0 %v539_v19  ;;  %v530_v29 = vmax.f32 %v498_v22, 0.0  ;;  %v1508_v22 = vld [vmem:[#allocation11 + $0x20] sm:$0xff]  }
 0x26d   :  { %v493_v28 = vadd.f32 %v1169_v56, %v492_v27  ;;  %v528_v31 = vmax.f32 %v490_v24, 0.0  ;;  %1418 = vmatpush3.bf16.msra.mxu0 %v1498_v60  ;;  %v1186_v24 = vld [vmem:[%s1936_s5] ss:$0 sm:$0xff]  ;;  %v1510_v60 = vld [vmem:[#allocation11 + $0x30] sm:$0xff]  }
 0x26e   :  { %v531_v30 = vmax.f32 %v501_v26, 0.0  ;;  %1419 = vmatprep.subr.bf16.mxu0 %v1688_v58 }
 0x26f   :  { %v529_v32 = vmax.f32 %v493_v28, 0.0 }
 0x270   :  { %v541_v33 = vpack.c.bf16 %v531_v30, %v530_v29 }
 0x271   :  { %v540_v34 = vpack.c.bf16 %v529_v32, %v528_v31  ;;  %v1347_v35 = vpop.f32.mrb[12].mxu1  ;;  %1420 = vmatpush3.bf16.msra.mxu0 %v1499_v20 }
 0x272   :  { %v514_v36 = vadd.f32 %v1347_v35, %v1169_v56  ;;  %v505_v37 = vpop.f32.mrb[13].mxu1  ;;  %1421 = vmatprep.subr.bf16.mxu0 %v1688_v58 }
 0x273   :  { %v506_v38 = vadd.f32 %v1169_v56, %v505_v37  ;;  %v1348_v39 = vpop.f32.mrb[14].mxu1  ;;  %1373 = vmatprep.mubr.bf16.mxu0 %v540_v34 }
 0x274   :  { %v517_v40 = vadd.f32 %v1348_v39, %v1169_v56  ;;  %v508_v41 = vpop.f32.mrb[15].mxu1  ;;  %1374 = vmatmul.mubr.bf16.gmra.mrb[24].mxu0 %v541_v33  ;;  %v534_v43 = vmax.f32 %v514_v36, 0.0 }
 0x275   :  { %v509_v42 = vadd.f32 %v1169_v56, %v508_v41  ;;  %v532_v45 = vmax.f32 %v506_v38, 0.0  ;;  %1422 = vmatpush3.bf16.msra.mxu0 %v1500_v21 }
 0x276   :  { %v535_v44 = vmax.f32 %v517_v40, 0.0  ;;  %1423 = vmatprep.subr.bf16.mxu0 %v1688_v58 }
 0x277   :  { %v533_v46 = vmax.f32 %v509_v42, 0.0 }
 0x278   :  { %v543_v54 = vpack.c.bf16 %v535_v44, %v534_v43 }
 0x279   :  { %v542_v55 = vpack.c.bf16 %v533_v46, %v532_v45 }
 0x27b   :  { %1377 = vmatprep.mubr.bf16.mxu0 %v542_v55 }
 0x27c   :  { %1378 = vmatmul.mubr.bf16.gmra.mrb[28].mxu0 %v543_v54 }
 0x27d   :  { %1429 = vmatprep.mubr.msk.bf16.mxu0 %vm1689_vm0, %v1688_v58 }
 0x337   :  { %v1367_v56 = vpop.f32.mrb[16].mxu0 }
 0x338   :  { %v642_v61 = vpop.f32.mrb[17].mxu0 }
 0x339   :  { %v1368_v62 = vpop.f32.mrb[18].mxu0 }
 0x33a   :  { %v706_v63 = vpack.c.bf16 %v1368_v62, %v1367_v56  ;;  %v645_v0 = vpop.f32.mrb[19].mxu0  ;;  %v1511_v56 = vld [vmem:[#allocation11 + $0x38] sm:$0xff]  }
 0x33b   :  { %v705_v1 = vpack.c.bf16 %v645_v0, %v642_v61  ;;  %v921_v61 = vld [vmem:[%s1938_s7] sm:$0x1]  ;;  %s1690_s7 = smov [#allocation13]  }
 0x33d   :  { %1381 = vmatprep.subr.bf16.mxu1 %v705_v1 }
 0x33e   :  { %1382 = vmatpush3.bf16.msra.mxu1 %v705_v1 }
 0x33f   :  { %v1371_v2 = vpop.f32.mrb[20].mxu0  ;;  %1383 = vmatprep.subr.bf16.mxu1 %v706_v63 }
 0x340   :  { %v658_v3 = vpop.f32.mrb[21].mxu0 }
 0x341   :  { %v1372_v4 = vpop.f32.mrb[22].mxu0 }
 0x342   :  { %v708_v5 = vpack.c.bf16 %v1372_v4, %v1371_v2  ;;  %v661_v6 = vpop.f32.mrb[23].mxu0  ;;  %1384 = vmatpush3.bf16.msra.mxu1 %v706_v63 }
 0x343   :  { %v707_v7 = vpack.c.bf16 %v661_v6, %v658_v3 }
 0x345   :  { %1385 = vmatprep.subr.bf16.mxu1 %v707_v7 }
 0x346   :  { %1386 = vmatpush3.bf16.msra.mxu1 %v707_v7 }
 0x347   :  { %v1375_v8 = vpop.f32.mrb[24].mxu0  ;;  %1387 = vmatprep.subr.bf16.mxu1 %v708_v5 }
 0x348   :  { %v674_v9 = vpop.f32.mrb[25].mxu0 }
 0x349   :  { %v1376_v10 = vpop.f32.mrb[26].mxu0 }
 0x34a   :  { %v710_v11 = vpack.c.bf16 %v1376_v10, %v1375_v8  ;;  %v677_v12 = vpop.f32.mrb[27].mxu0  ;;  %1388 = vmatpush3.bf16.msra.mxu1 %v708_v5  ;;  %v1117_v5 = vlaneseq }
 0x34b   :  { %v709_v13 = vpack.c.bf16 %v677_v12, %v674_v9 }
 0x34c   :  { %v1118_v6 = vand.u32 127, %v1117_v5 }
 0x34d   :  { %1389 = vmatprep.subr.bf16.mxu1 %v709_v13 }
 0x34e   :  { %1390 = vmatpush3.bf16.msra.mxu1 %v709_v13  ;;  %vm1119_vm1 = vcmp.lt.s32.totalorder %v1118_v6, 8 }
 0x34f   :  { %v1379_v14 = vpop.f32.mrb[28].mxu0  ;;  %1391 = vmatprep.subr.bf16.mxu1 %v710_v11 }
 0x350   :  { %v690_v15 = vpop.f32.mrb[29].mxu0 }
 0x351   :  { %v1380_v16 = vpop.f32.mrb[30].mxu0 }
 0x352   :  { %v712_v17 = vpack.c.bf16 %v1380_v16, %v1379_v14  ;;  %v693_v18 = vpop.f32.mrb[31].mxu0  ;;  %1392 = vmatpush3.bf16.msra.mxu1 %v710_v11 }
 0x353   :  { %v711_v19 = vpack.c.bf16 %v693_v18, %v690_v15 }
 0x355   :  { %1393 = vmatprep.subr.bf16.mxu1 %v711_v19 }
 0x356   :  { %1394 = vmatpush3.bf16.msra.mxu1 %v711_v19 }
 0x357   :  { %1395 = vmatprep.subr.bf16.mxu1 %v712_v17 }
 0x35a   :  { %1396 = vmatpush3.bf16.msra.mxu1 %v712_v17 }
 0x35b   :  { %1433 = vmatprep.subr.bf16.mxu1 %v1688_v58 }
 0x35d   :  { %1398 = vmatmul.mubr.bf16.vlgmr.msra.gmra.mrb[16].mxu1 %v1860_v47  ;;  %v1501_v47 = vld [vmem:[#allocation10 + $0x28] sm:$0xff]  }
 0x35e   :  { %1401 = vmatprep.mubr.bf16.mxu1 %v1862_v48  ;;  %1424 = vmatpush3.bf16.msra.mxu0 %v1501_v47  ;;  %v1502_v48 = vld [vmem:[#allocation10 + $0x30] sm:$0xff]  }
 0x35f   :  { %1425 = vmatprep.subr.bf16.mxu0 %v1688_v58 }
 0x362   :  { %1426 = vmatpush3.bf16.msra.mxu0 %v1502_v48 }
 0x363   :  { %1427 = vmatprep.subr.bf16.mxu0 %v1688_v58 }
 0x365   :  { %1402 = vmatmul.mubr.bf16.gmra.mrb[20].mxu1 %v1866_v49  ;;  %v1503_v49 = vld [vmem:[#allocation10 + $0x38] sm:$0xff]  }
 0x366   :  { %1405 = vmatprep.mubr.bf16.mxu1 %v1868_v50  ;;  %1428 = vmatpush3.bf16.msra.mxu0 %v1503_v49  ;;  %v1504_v50 = vld [vmem:[#allocation11] sm:$0xff]  }
 0x367   :  { %1434 = vmatpush3.bf16.msra.mxu1 %v1504_v50 }
 0x368   :  { %1435 = vmatprep.subr.bf16.mxu1 %v1688_v58 }
 0x36d   :  { %1406 = vmatmul.mubr.bf16.gmra.mrb[24].mxu1 %v1872_v51  ;;  %v1505_v51 = vld [vmem:[#allocation11 + $0x8] sm:$0xff]  }
 0x36e   :  { %1409 = vmatprep.mubr.bf16.mxu1 %v1874_v52  ;;  %1436 = vmatpush3.bf16.msra.mxu1 %v1505_v51  ;;  %v1506_v52 = vld [vmem:[#allocation11 + $0x10] sm:$0xff]  }
 0x36f   :  { %1437 = vmatprep.subr.bf16.mxu1 %v1688_v58 }
 0x372   :  { %1438 = vmatpush3.bf16.msra.mxu1 %v1506_v52 }
 0x373   :  { %1439 = vmatprep.subr.bf16.mxu1 %v1688_v58 }
 0x375   :  { %1410 = vmatmul.mubr.bf16.gmra.mrb[28].mxu1 %v1878_v53  ;;  %v1507_v53 = vld [vmem:[#allocation11 + $0x18] sm:$0xff]  }
 0x376   :  { %1449 = vmatprep.mubr.msk.bf16.mxu1 %vm1689_vm0, %v1688_v58  ;;  %1440 = vmatpush3.bf16.msra.mxu1 %v1507_v53 }
 0x377   :  { %1441 = vmatprep.subr.bf16.mxu1 %v1688_v58 }
 0x37a   :  { %1442 = vmatpush3.bf16.msra.mxu1 %v1508_v22 }
 0x37b   :  { %1443 = vmatprep.subr.bf16.mxu1 %v1688_v58 }
 0x37e   :  { %1444 = vmatpush3.bf16.msra.mxu1 %v1509_v23 }
 0x37f   :  { %1445 = vmatprep.subr.bf16.mxu1 %v1688_v58 }
 0x382   :  { %1446 = vmatpush3.bf16.msra.mxu1 %v1510_v60 }
 0x383   :  { %1447 = vmatprep.subr.bf16.mxu1 %v1688_v58  ;;  %v1028_v58 = vld [vmem:[%s1940_s9] sm:$0x1]  ;;  %s1141_s9 = sshll.u32 %s1690_s7, 4  ;;  %s1142_s9 = int_to_ptr.vmem [resolvable:$true] %s1141_s9 }
 0x384   :  { %s1648_s29 = scalar_lea.vmem %s1142_s9, 16  ;;  %s1652_s30 = scalar_lea.vmem %s1142_s9, 32 }
 0x385   :  { %p1649_p6 = scmp.ne.s32.totalorder %s1142_s9, %s1648_s29  ;;  %p1653_p7 = scmp.lt.s32.totalorder %s1142_s9, %s1142_s9 }
 0x386   :  { %1448 = vmatpush3.bf16.msra.mxu1 %v1511_v56  ;;  %p1654_p8 = scmp.lt.s32.totalorder %s1652_s30, %s1648_s29 }
 0x388   :  { %p1655_p9 = por %p1654_p8, %p1653_p7 }
 0x38a   :  { %p1656_p10 = pnand %p1655_p9, %p1649_p6 }
 0x430   :  { %v1399_v25 = vpop.f32.mrb[16].mxu1 }
 0x431   :  { %v754_v26 = vpop.f32.mrb[17].mxu1 }
 0x432   :  { %v755_v27 = vadd.f32 %v1186_v24, %v754_v26  ;;  %v1400_v28 = vpop.f32.mrb[18].mxu1 }
 0x433   :  { %v757_v29 = vpop.f32.mrb[19].mxu1 }
 0x434   :  { %v817_v30 = vmax.f32 %v755_v27, 0.0 }
 0x436   :  { %v897_v31 = vrot.slane %v817_v30, 4 }
 0x438   :  { %v898_v32 = vadd.f32 %v897_v31, %v817_v30  ;;  %v1403_v33 = vpop.f32.mrb[20].mxu1 }
 0x439   :  { %v770_v34 = vpop.f32.mrb[21].mxu1 }
 0x43a   :  { %v899_v35 = vrot.slane %v898_v32, 2  ;;  %v1404_v36 = vpop.f32.mrb[22].mxu1 }
 0x43b   :  { %v773_v37 = vpop.f32.mrb[23].mxu1 }
 0x43c   :  { %v900_v38 = vadd.f32 %v899_v35, %v898_v32 }
 0x43e   :  { %v901_v39 = vrot.slane %v900_v38, 1 }
 0x440   :  { %v902_v40 = vadd.f32 %v901_v39, %v900_v38  ;;  %v1407_v41 = vpop.f32.mrb[24].mxu1 }
 0x441   :  { %v786_v42 = vpop.f32.mrb[25].mxu1 }
 0x442   :  { %v903_v43 = vmax.f32 %v902_v40, 0.0  ;;  %v1408_v44 = vpop.f32.mrb[26].mxu1 }
 0x443   :  { %v789_v45 = vpop.f32.mrb[27].mxu1 }
 0x444   :  { %v904_v46 = vpack.c.bf16 %v903_v43, %v903_v43 }
 0x446   :  { %1430 = vmatmul.mubr.bf16.vlgmr.msra.gmra.mrb[32].mxu0 %v904_v46 }
 0x448   :  { %v1411_v54 = vpop.f32.mrb[28].mxu1 }
 0x449   :  { %v802_v55 = vpop.f32.mrb[29].mxu1 }
 0x44a   :  { %v1412_v57 = vpop.f32.mrb[30].mxu1 }
 0x44b   :  { %v805_v59 = vpop.f32.mrb[31].mxu1 }
 0x519   :  { %v1004_v62 = vpop.f32.mrb[32].mxu0 }
 0x51a   :  { %v1005_v63 = vadd.f32 %v1004_v62, %v921_v61  ;;  %v1431_v0 = vpop.f32.mrb[33].mxu0 }
 0x51b   :  { %v1007_v1 = vpop.f32.mrb[34].mxu0 }
 0x51c   :  { %v1010_v2 = vmax.f32 %v1005_v63, 0.0  ;;  %v1432_v3 = vpop.f32.mrb[35].mxu0 }
 0x51e   :  { %v1011_v4 = vpack.c.bf16 %v1010_v2, %v1010_v2 }
 0x520   :  { %1450 = vmatmul.mubr.bf16.vlgmr.msra.gmra.mrb[32].mxu1 %v1011_v4 }
 0x5f3   :  { %v1111_v7 = vpop.f32.mrb[32].mxu1 }
 0x5f4   :  { %v1112_v8 = vadd.f32 %v1111_v7, %v1028_v58  ;;  %v1451_v9 = vpop.f32.mrb[33].mxu1 }
 0x5f5   :  { %v1114_v10 = vpop.f32.mrb[34].mxu1 }
 0x5f6   :  { %v1452_v11 = vpop.f32.mrb[35].mxu1  ;;  %v1120_v12 = vsel %vm1119_vm1, %v1112_v8, -1e+30 }
 0x5f7   :  { %v1122_v13 = vsel %vm1121_vm2, %v1120_v12, -inf }
 0x5f8   :  { %1123 = vmax.xlane.f32.xlu0 %v1122_v13 }
 0x685   :  { %v1124_v14 = vpop.xlane.xlu0 %1123 }
 0x686   :  { %v1125_v15 = vsub.f32 %v1120_v12, %v1124_v14 }
 0x688   :  { %v1126_v16 = vmul.f32 1.442695, %v1125_v15 }
 0x68a   :  { %1512 = vpow2.f32 %v1126_v16 }
 0x694   :  { %v1513_v17 = vpop.eup %1512 }
 0x695   :  { %v1128_v18 = vsel %vm1121_vm2, %v1513_v17, 0.0 }
 0x696   :  { %1129 = vadd.xlane.f32.xlu0 %v1128_v18 }
 0x723   :  { %v1130_v19 = vpop.xlane.xlu0 %1129 }
 0x724   :  { %1514 = vlog2.f32 %v1130_v19 }
 0x72e   :  { %v1515_v20 = vpop.eup %1514 }
 0x72f   :  { %v1132_v21 = vmul.f32 0.6931472, %v1515_v20 }
 0x731   :  { %v1133_v47 = vsub.f32 %v1125_v15, %v1132_v21 }
 0x733   :  { %1134 = vst [vmem:[#allocation13] sm:$0x1] %v1133_v47 }
 0x734   :  { %1659 = shalt.err (!%p1656_p10)
}
 0x735   :  { %s1660_s16 = scalar_lea.hbm %s1941_s10, 16 }
 0x736   :  { %p1661_p11 = scmp.ne.s32.totalorder %s1941_s10, %s1660_s16  ;;  %p1664_p12 = scmp.lt.u32.totalorder %s1660_s16, %s1941_s10 }
 0x738   :  { %p1666_p13 = pnand %p1664_p12, %p1661_p11 }
 0x73a   :  { %1669 = shalt.err (!%p1666_p13)
}
 0x73b   :  { %1144 = dma.vmem_to_hbm [thread:$0]  %s1142_s9, 16, %s1941_s10, [#allocation4]  }
 0x73c   :  { %1678 = dma.done.wait [#allocation4], 16  }
 0x73d   :  { %1679 = vsyncadd [#allocation4], 4294967280 }
 0x73e   :  { %1148 = vsyncpa [#allocation3], 1 }
 0x73f   :  { %1149 = vsyncpa [#allocation6], 1 }
 0x740   :  { %1150 = vsyncpa [#allocation9], 1 }
 0x741   :  { %1151 = vsyncpa [#allocation12], 1 }
 0x742   :  { %1152 = vsyncpa [#allocation4], 1 }

</bundles_post_ra>
